<compile_context>
chip_gen: v6e
topology: v6e:2x2x1
jax: 0.10.0
libtpu: 0.0.40
codegen_flags: <defaults>
</compile_context>

<pallas_src>
import functools

import jax
import jax.numpy as jnp
from jax.experimental import pallas as pl
from jax.experimental.pallas import tpu as pltpu


def _focal_loss_kernel(logits_ref, target_ref, weight_ref, out_ref, *,
                       gamma, n_rows, tile_n):
    # Upcast on load (free VPU slot); keep all math in f32.
    x = logits_ref[...].astype(jnp.float32)      # (tile_n, C)
    t = target_ref[...]                          # (tile_n, 1) int32
    w = weight_ref[...].astype(jnp.float32)      # (1, C)

    # Numerically stable log-softmax along the class (lane) axis.
    m = jnp.max(x, axis=-1, keepdims=True)
    z = x - m
    lse = jnp.log(jnp.sum(jnp.exp(z), axis=-1, keepdims=True))
    logp = z - lse                               # (tile_n, C)

    # Gather log-prob / class-weight at the target class via one-hot (VPU friendly).
    col = jax.lax.broadcasted_iota(jnp.int32, x.shape, 1)        # (tile_n, C)
    onehot = (col == t).astype(jnp.float32)                      # (tile_n, C)
    logp_t = jnp.sum(logp * onehot, axis=-1, keepdims=True)      # (tile_n, 1)
    w_t = jnp.sum(w * onehot, axis=-1, keepdims=True)            # (tile_n, 1)

    # ce = F.cross_entropy(..., weight, reduction='none')
    ce = -w_t * logp_t                                           # (tile_n, 1)
    pt = jnp.exp(-ce)
    om = jnp.maximum(1.0 - pt, 0.0)   # clamp: cheap insurance for fractional gamma
    if float(gamma) == 2.0:
        mod = om * om                 # two VPU multiplies, no EUP pow
    else:
        mod = om ** jnp.float32(gamma)
    focal = mod * ce                                             # (tile_n, 1)

    # Mask rows beyond N in the (possibly ragged) last tile.
    i = pl.program_id(0)
    row = jax.lax.broadcasted_iota(jnp.int32, focal.shape, 0) + i * tile_n
    focal = jnp.where(row < n_rows, focal, 0.0)

    # Per-tile partial sum -> own (1,1) output block (parallel-safe).
    out_ref[...] = jnp.sum(focal).reshape(1, 1)


def focal_loss(logits, target, weight=None, gamma=2.0, tile_n=None):
    """Pallas TPU implementation of FocalLoss.forward with reduction='mean'."""
    n, c = logits.shape
    if weight is None:
        weight = jnp.ones((c,), dtype=jnp.float32)
    t2 = target.reshape(n, 1).astype(jnp.int32)
    w2 = weight.reshape(1, c).astype(jnp.float32)

    itemsize = jnp.dtype(logits.dtype).itemsize
    if tile_n is None:
        # Generation-safe tile sizing: ~8 MiB per logits buffer (x2 for double
        # buffering) stays far below v7x's 32 MiB scoped-VMEM default.
        bytes_per_row = max(1, c * itemsize)
        budget = 8 * 1024 * 1024
        tile_n = max(8, min(1024, budget // bytes_per_row))
        tile_n = (tile_n // 8) * 8          # sublane multiple
    if tile_n >= n:
        tile_n = n                          # full block: no divisibility constraint
    num_tiles = (n + tile_n - 1) // tile_n

    cost = pl.CostEstimate(
        flops=10 * n * c,
        transcendentals=n * c + 2 * n,
        bytes_accessed=n * c * itemsize + n * 4 + c * 4 + num_tiles * 4,
    )

    partials = pl.pallas_call(
        functools.partial(_focal_loss_kernel, gamma=float(gamma),
                          n_rows=n, tile_n=tile_n),
        out_shape=jax.ShapeDtypeStruct((num_tiles, 1), jnp.float32),
        grid=(num_tiles,),
        in_specs=[
            pl.BlockSpec((tile_n, c), lambda i: (i, 0)),   # logits (native dtype)
            pl.BlockSpec((tile_n, 1), lambda i: (i, 0)),   # targets
            pl.BlockSpec((1, c), lambda i: (0, 0)),        # class weights
        ],
        out_specs=pl.BlockSpec((1, 1), lambda i: (i, 0)),
        compiler_params=pltpu.CompilerParams(
            dimension_semantics=("parallel",)),
        cost_estimate=cost,
    )(logits, t2, w2)

    # Tiny final reduction: mean over the batch.
    return jnp.sum(partials) / jnp.float32(n)


def _focal_loss_ref(logits, target, weight, gamma=2.0):
    """Pure-JAX reference (mirrors the PyTorch module)."""
    logp = jax.nn.log_softmax(logits.astype(jnp.float32), axis=-1)
    logp_t = jnp.take_along_axis(logp, target[:, None], axis=-1)[:, 0]
    w_t = weight[target]
    ce = -w_t * logp_t
    pt = jnp.exp(-ce)
    focal = (1.0 - pt) ** gamma * ce
    return jnp.mean(focal)


if __name__ == "__main__":
    key = jax.random.PRNGKey(0)
    k1, k2, k3, k4 = jax.random.split(key, 4)

    # Test 1: small f32 batch, single tile.
    N, C = 8, 32
    logits = jax.random.normal(k1, (N, C), dtype=jnp.float32) * 2.0
    target = jax.random.randint(k2, (N,), 0, C, dtype=jnp.int32)
    weight = jnp.ones((C,), dtype=jnp.float32)      # weight=None -> uniform ones
    out = jax.block_until_ready(focal_loss(logits, target, weight, gamma=2.0))
    ref = _focal_loss_ref(logits, target, weight, gamma=2.0)
    assert jnp.allclose(out, ref, rtol=1e-5, atol=1e-6), (out, ref)

    # Test 2: bf16 logits, non-uniform weights, multi-tile grid with a ragged
    # last tile (exercises the native-dtype upcast and row masking paths).
    N2, C2 = 20, 128
    logits2 = (jax.random.normal(k3, (N2, C2), dtype=jnp.float32) * 2.0
               ).astype(jnp.bfloat16)
    target2 = jax.random.randint(k4, (N2,), 0, C2, dtype=jnp.int32)
    weight2 = jnp.linspace(0.5, 1.5, C2, dtype=jnp.float32)
    out2 = jax.block_until_ready(
        focal_loss(logits2, target2, weight2, gamma=2.0, tile_n=8))
    ref2 = _focal_loss_ref(logits2, target2, weight2, gamma=2.0)
    assert jnp.allclose(out2, ref2, rtol=1e-4, atol=1e-5), (out2, ref2)

    print("KERNEL_OK")
</pallas_src>

<mosaic_0001>
module attributes {stable_mosaic.version = 11 : i64} {
  func.func @_focal_loss_kernel(%arg0: i32, %arg1: memref<8x32xf32, #tpu.memory_space<vmem>>, %arg2: memref<8x1xi32, #tpu.memory_space<vmem>>, %arg3: memref<1x32xf32, #tpu.memory_space<vmem>>, %arg4: memref<1x1xf32, #tpu.memory_space<vmem>>) attributes {dimension_semantics = [#tpu.dimension_semantics<parallel>], iteration_bounds = array<i64: 1>, scalar_prefetch = 0 : i64, scratch_operands = 0 : i64, tpu.core_type = #tpu.core_type<tc>, window_params = [{transform_indices = @transform_0, window_bounds = array<i64: 8, 32>}, {transform_indices = @transform_1, window_bounds = array<i64: 8, 1>}, {pipeline_mode = #tpu.pipeline_mode<synchronous>, transform_indices = @transform_2, window_bounds = array<i64: 1, 32>}, {transform_indices = @transform_3, window_bounds = array<i64: 1, 1>}]} {
    %c0 = arith.constant 0 : index
    %c0_0 = arith.constant 0 : index
    %0 = vector.load %arg1[%c0, %c0_0] : memref<8x32xf32, #tpu.memory_space<vmem>>, vector<8x32xf32>
    %c0_1 = arith.constant 0 : index
    %c0_2 = arith.constant 0 : index
    %1 = vector.load %arg2[%c0_1, %c0_2] : memref<8x1xi32, #tpu.memory_space<vmem>>, vector<8x1xi32>
    %c0_3 = arith.constant 0 : index
    %c0_4 = arith.constant 0 : index
    %2 = vector.load %arg3[%c0_3, %c0_4] : memref<1x32xf32, #tpu.memory_space<vmem>>, vector<1x32xf32>
    %cst = arith.constant dense<0xFF800000> : vector<8xf32>
    %3 = vector.multi_reduction <maximumf>, %0, %cst [1] : vector<8x32xf32> to vector<8xf32>
    %4 = vector.shape_cast %3 : vector<8xf32> to vector<8x1xf32>
    %5 = vector.broadcast %4 : vector<8x1xf32> to vector<8x32xf32>
    %6 = arith.subf %0, %5 : vector<8x32xf32>
    %7 = math.exp %6 : vector<8x32xf32>
    %cst_5 = arith.constant dense<0.000000e+00> : vector<8xf32>
    %8 = vector.multi_reduction <add>, %7, %cst_5 [1] : vector<8x32xf32> to vector<8xf32>
    %9 = vector.shape_cast %8 : vector<8xf32> to vector<8x1xf32>
    %10 = math.log %9 : vector<8x1xf32>
    %11 = vector.broadcast %10 : vector<8x1xf32> to vector<8x32xf32>
    %12 = arith.subf %6, %11 : vector<8x32xf32>
    %13 = tpu.iota {dimensions = array<i32: 1>} : vector<8x32xi32>
    %14 = vector.broadcast %1 : vector<8x1xi32> to vector<8x32xi32>
    %15 = arith.cmpi eq, %13, %14 : vector<8x32xi32>
    %16 = arith.extui %15 : vector<8x32xi1> to vector<8x32xi32>
    %17 = arith.sitofp %16 : vector<8x32xi32> to vector<8x32xf32>
    %18 = arith.mulf %12, %17 : vector<8x32xf32>
    %cst_6 = arith.constant dense<0.000000e+00> : vector<8xf32>
    %19 = vector.multi_reduction <add>, %18, %cst_6 [1] : vector<8x32xf32> to vector<8xf32>
    %20 = vector.shape_cast %19 : vector<8xf32> to vector<8x1xf32>
    %21 = vector.broadcast %2 : vector<1x32xf32> to vector<8x32xf32>
    %22 = arith.mulf %21, %17 : vector<8x32xf32>
    %cst_7 = arith.constant dense<0.000000e+00> : vector<8xf32>
    %23 = vector.multi_reduction <add>, %22, %cst_7 [1] : vector<8x32xf32> to vector<8xf32>
    %24 = vector.shape_cast %23 : vector<8xf32> to vector<8x1xf32>
    %cst_8 = arith.constant 0.000000e+00 : f32
    %25 = vector.broadcast %cst_8 : f32 to vector<8x1xf32>
    %26 = arith.subf %25, %24 : vector<8x1xf32>
    %27 = arith.mulf %26, %20 : vector<8x1xf32>
    %cst_9 = arith.constant 0.000000e+00 : f32
    %28 = vector.broadcast %cst_9 : f32 to vector<8x1xf32>
    %29 = arith.subf %28, %27 : vector<8x1xf32>
    %30 = math.exp %29 : vector<8x1xf32>
    %cst_10 = arith.constant 1.000000e+00 : f32
    %31 = vector.broadcast %cst_10 : f32 to vector<8x1xf32>
    %32 = arith.subf %31, %30 : vector<8x1xf32>
    %cst_11 = arith.constant 0.000000e+00 : f32
    %33 = vector.broadcast %cst_11 : f32 to vector<8x1xf32>
    %34 = arith.maximumf %32, %33 : vector<8x1xf32>
    %35 = arith.mulf %34, %34 : vector<8x1xf32>
    %36 = arith.mulf %35, %27 : vector<8x1xf32>
    %37 = tpu.iota {dimensions = array<i32: 0>} : vector<8x1xi32>
    %c8_i32 = arith.constant 8 : i32
    %38 = arith.muli %arg0, %c8_i32 : i32
    %39 = vector.broadcast %38 : i32 to vector<8x1xi32>
    %40 = arith.addi %37, %39 : vector<8x1xi32>
    %c8_i32_12 = arith.constant 8 : i32
    %41 = vector.broadcast %c8_i32_12 : i32 to vector<8x1xi32>
    %42 = arith.cmpi slt, %40, %41 : vector<8x1xi32>
    %cst_13 = arith.constant 0.000000e+00 : f32
    %43 = vector.broadcast %cst_13 : f32 to vector<8x1xf32>
    %44 = arith.select %42, %36, %43 : vector<8x1xi1>, vector<8x1xf32>
    %45 = vector.shape_cast %44 : vector<8x1xf32> to vector<1x8x1xf32>
    %cst_14 = arith.constant dense<0.000000e+00> : vector<1xf32>
    %46 = vector.multi_reduction <add>, %45, %cst_14 [1, 2] : vector<1x8x1xf32> to vector<1xf32>
    %47 = vector.shape_cast %46 : vector<1xf32> to vector<1x1x1xf32>
    %48 = vector.extract %47[0, 0, 0] : f32 from vector<1x1x1xf32>
    %49 = vector.broadcast %48 : f32 to vector<1x1xf32>
    %c0_15 = arith.constant 0 : index
    %c0_16 = arith.constant 0 : index
    %50 = vector.load %arg4[%c0_15, %c0_16] : memref<1x1xf32, #tpu.memory_space<vmem>>, vector<1x1xf32>
    tpu.vector_store %arg4[%c0_15, %c0_16], %49 {strides = array<i32>} : memref<1x1xf32, #tpu.memory_space<vmem>>, vector<1x1xf32>,
    return
  }
  func.func @transform_0(%arg0: i32) -> (i32, i32) {
    %c0_i32 = arith.constant 0 : i32
    %c0_i32_0 = arith.constant 0 : i32
    return %arg0, %c0_i32 : i32, i32
  }
  func.func @transform_1(%arg0: i32) -> (i32, i32) {
    %c0_i32 = arith.constant 0 : i32
    %c0_i32_0 = arith.constant 0 : i32
    return %arg0, %c0_i32 : i32, i32
  }
  func.func @transform_2(%arg0: i32) -> (i32, i32) {
    %c0_i32 = arith.constant 0 : i32
    %c0_i32_0 = arith.constant 0 : i32
    %c0_i32_1 = arith.constant 0 : i32
    return %c0_i32, %c0_i32_0 : i32, i32
  }
  func.func @transform_3(%arg0: i32) -> (i32, i32) {
    %c0_i32 = arith.constant 0 : i32
    %c0_i32_0 = arith.constant 0 : i32
    return %arg0, %c0_i32 : i32, i32
  }
}

</mosaic_0001>

<bundles_post_ra>
// kernel: tpu_custom_call.1
= control target key start
LH: loop header
LB: loop body
LE: loop exit
PB: predicated region body
PF: predicated region fallthrough
CT: control target
= control target key end

     0   :  { %vm18_vm0 = vcmask 261120   ;;  %s173_s0 = inlined_call_operand.vmem [shape: f32[8,32], index: 0, kind: input, shape index: {}]   ;;  %s174_s1 = inlined_call_operand.vmem [shape: s32[8,1], index: 1, kind: input, shape index: {}]   ;;  %s175_s2 = inlined_call_operand.vmem [shape: f32[1,32], index: 2, kind: input, shape index: {}]   ;;  %s176_s3 = inlined_call_operand.hbm [shape: f32[1,1], index: 3, kind: output, shape index: {}]  }
   0x1   :  { %v15_v0 = vld [vmem:[%s173_s0] sm:$0xff] }
   0x2   :  { %8 = vsyncpa [#allocation3], 0  ;;  %v19_v1 = vsel %vm18_vm0, %v15_v0, -inf  ;;  %v16_v2 = vld [vmem:[%s174_s1] sm:$0xff]  ;;  %v134_v3 = vmov 0   ;;  %v31_v9 = vlaneseq  ;;  %v135_v13 = vmov 0.0  }
   0x3   :  { %20 = vmax.xlane.f32.xlu0 %v19_v1  ;;  %104 = vset.pattern.permute.xlu1 %v134_v3  ;;  %v98_v12 = vld [vmem:[%s175_s2] ss:$0 sm:$0xff]  ;;  %vm69_vm2 = vcmask 7168   ;;  %s136_s1 = smov [#allocation2]   ;;  %vm81_vm3 = vcmask 0  }
   0x4   :  { %105 = vset.pattern.permute.xlu0 %v134_v3  ;;  %34 = vperm.xlu1 %104, %v16_v2   ;;  %v32_v10 = vand.u32 127, %v31_v9  ;;  %s89_s2 = sshll.u32 %s136_s1, 4  ;;  %s90_s2 = int_to_ptr.vmem [resolvable:$true] %s89_s2 }
   0x5   :  { %s112_s18 = scalar_lea.vmem %s90_s2, 16  ;;  %s116_s19 = scalar_lea.vmem %s90_s2, 32 }
   0x6   :  { %p113_p0 = scmp.ne.s32.totalorder %s90_s2, %s112_s18  ;;  %p117_p1 = scmp.lt.s32.totalorder %s90_s2, %s90_s2 }
   0x7   :  { %p118_p2 = scmp.lt.s32.totalorder %s116_s19, %s112_s18 }
   0x9   :  { %p119_p3 = por %p118_p2, %p117_p1 }
   0xb   :  { %p120_p4 = pnand %p119_p3, %p113_p0 }
  0x7f   :  { %v35_v11 = vpop.permute.xlu1 %34 }
  0x80   :  { %vm36_vm1 = vcmp.eq.s32.totalorder %v32_v10, %v35_v11 }
  0x81   :  { %v97_v14 = vsel %vm36_vm1, 1.0, %v135_v13 }
  0x82   :  { %v49_v15 = vmul.f32 %v98_v12, %v97_v14 }
  0x84   :  { %v50_v16 = vsel %vm18_vm0, %v49_v15, 0.0 }
  0x85   :  { %51 = vadd.xlane.f32.xlu1 %v50_v16 }
  0x8c   :  { %v21_v4 = vpop.xlane.xlu0 %20 }
  0x8d   :  { %v22_v5 = vsub.f32 %v15_v0, %v21_v4 }
  0x8f   :  { %v23_v6 = vmul.f32 1.442695, %v22_v5 }
  0x91   :  { %106 = vpow2.f32 %v23_v6 }
  0x9e   :  { %v107_v7 = vpop.eup %106 }
  0x9f   :  { %v25_v8 = vsel %vm18_vm0, %v107_v7, 0.0 }
  0xa0   :  { %26 = vadd.xlane.f32.xlu0 %v25_v8 }
 0x10e   :  { %v52_v23 = vpop.xlane.xlu1 %51 }
 0x10f   :  { %v53_v24 = vsub.f32 0.0, %v52_v23 }
 0x129   :  { %v27_v17 = vpop.xlane.xlu0 %26 }
 0x12a   :  { %108 = vlog2.f32 %v27_v17 }
 0x137   :  { %v109_v18 = vpop.eup %108 }
 0x138   :  { %v29_v19 = vmul.f32 0.6931472, %v109_v18 }
 0x13a   :  { %v30_v20 = vsub.f32 %v22_v5, %v29_v19 }
 0x13c   :  { %v39_v21 = vmul.f32 %v97_v14, %v30_v20 }
 0x13e   :  { %v40_v22 = vsel %vm18_vm0, %v39_v21, 0.0 }
 0x13f   :  { %41 = vadd.xlane.f32.xlu0 %v40_v22 }
 0x1c8   :  { %v42_v25 = vpop.xlane.xlu0 %41 }
 0x1c9   :  { %v54_v26 = vmul.f32 %v53_v24, %v42_v25 }
 0x1cb   :  { %v55_v27 = vsub.f32 0.0, %v54_v26 }
 0x1cd   :  { %v56_v28 = vmul.f32 1.442695, %v55_v27 }
 0x1cf   :  { %110 = vpow2.f32 %v56_v28 }
 0x1dc   :  { %v111_v29 = vpop.eup %110 }
 0x1dd   :  { %v58_v30 = vsub.f32 1.0, %v111_v29 }
 0x1df   :  { %v59_v31 = vmax.f32 %v58_v30, 0.0 }
 0x1e1   :  { %v60_v32 = vmul.f32 %v59_v31, %v59_v31 }
 0x1e3   :  { %v61_v33 = vmul.f32 %v60_v32, %v54_v26 }
 0x1e5   :  { %v70_v34 = vsel %vm69_vm2, %v61_v33, 0.0 }
 0x1e6   :  { %71 = vadd.xlane.f32.xlu0 %v70_v34 }
 0x26f   :  { %v72_v35 = vpop.xlane.xlu0 %71 }
 0x270   :  { %v73_v36 = vrot.slane %v72_v35, 4 }
 0x272   :  { %v74_v37 = vadd.f32 %v73_v36, %v72_v35 }
 0x274   :  { %v75_v38 = vrot.slane %v74_v37, 2 }
 0x276   :  { %v76_v39 = vadd.f32 %v75_v38, %v74_v37 }
 0x278   :  { %v77_v40 = vrot.slane %v76_v39, 1 }
 0x27a   :  { %v78_v41 = vadd.f32 %v77_v40, %v76_v39 }
 0x27c   :  { %99 = vpush %v78_v41 }
 0x2ad   :  { %s100_s17 = spop %99 }
 0x2ae   :  { %v80_v42 = vstv %s100_s17 }
 0x2af   :  { %82 = vst.msk [vmem:[#allocation2] sm:$0x1] %vm81_vm3, %v80_v42 }
 0x2b0   :  { %123 = shalt.err (!%p120_p4)
}
 0x2b1   :  { %92 = dma.vmem_to_hbm [thread:$0]  %s90_s2, 16, %s176_s3, [#allocation3]  }
 0x2b2   :  { %132 = dma.done.wait [#allocation3], 16  }
 0x2b3   :  { %133 = vsyncadd [#allocation3], 4294967280 }
 0x2b4   :  { %96 = vsyncpa [#allocation3], 1 }

</bundles_post_ra>
